<compile_context>
chip_gen: v5e
topology: v5e:2x2
jax: 0.10.0
libtpu: 0.0.40
codegen_flags: <defaults>
</compile_context>

<pallas_src>
import numpy as np
import jax
import jax.numpy as jnp
from jax.experimental import pallas as pl
from jax.experimental.pallas import tpu as pltpu

T_SAMPLES = 81          # np.linspace(0, 1, 81)
TPAD = 128              # lane-dense curve-sample axis (81 padded to 128)
OUT_SUB, OUT_LANE = 8, 128   # one full (8,128) vreg output tile per curve


def _make_bezier_kernel(n_inner, npad):
    inv_step = 1.0 / (T_SAMPLES - 1)

    def kernel(ctrl_ref, pts_ref, out_ref):
        b = pl.program_id(0)
        base = 8 * b
        x0 = ctrl_ref[base + 0]
        x1 = ctrl_ref[base + 1]
        x2 = ctrl_ref[base + 2]
        x3 = ctrl_ref[base + 3]
        y0 = ctrl_ref[base + 4]
        y1 = ctrl_ref[base + 5]
        y2 = ctrl_ref[base + 6]
        y3 = ctrl_ref[base + 7]

        # t built in-kernel; padded lanes clamp to the last valid sample (t=1),
        # duplicating a real column so they can never change the min.
        col = jax.lax.broadcasted_iota(jnp.int32, (1, TPAD), 1)
        t = jnp.minimum(col, T_SAMPLES - 1).astype(jnp.float32) * inv_step
        s = 1.0 - t

        # Cubic Bezier via de Casteljau (matches the PyTorch expression).
        bx = s * (s * (s * x0 + t * x1) + t * (s * x1 + t * x2)) \
           + t * (s * (s * x1 + t * x2) + t * (s * x2 + t * x3))
        by = s * (s * (s * y0 + t * y1) + t * (s * y1 + t * y2)) \
           + t * (s * (s * y1 + t * y2) + t * (s * y2 + t * y3))

        pts = pts_ref[0]            # (NPAD, 2) inner points for this curve
        px = pts[:, 0:1]            # (NPAD, 1)
        py = pts[:, 1:2]            # (NPAD, 1)

        dx = bx - px                # (NPAD, TPAD)
        dy = by - py
        d2 = dx * dx + dy * dy

        # Min over curve samples first, sqrt only on the (NPAD,1) minima.
        min_d = jnp.sqrt(jnp.min(d2, axis=1, keepdims=True))   # (NPAD, 1)

        # Mask padded point rows (only emitted if padding exists).
        if npad > n_inner:
            row = jax.lax.broadcasted_iota(jnp.int32, (npad, 1), 0)
            min_d = jnp.where(row < n_inner, min_d, 0.0)

        total = jnp.sum(min_d)
        # Full lane-dense tile store -> unmasked vst; blocks disjoint per curve.
        out_ref[...] = jnp.full((1, OUT_SUB, OUT_LANE), total, dtype=jnp.float32)

    return kernel


def bezier_forward_batched(ps_batch, ctps_batch):
    """ps_batch: (B, N, 2) points per curve; ctps_batch: (B, 4) = [x1,y1,x2,y2].

    Returns (B,) float32: per-curve sum of min distances from inner points to
    the sampled cubic Bezier.
    """
    ps = jnp.asarray(ps_batch, jnp.float32)
    ct = jnp.asarray(ctps_batch, jnp.float32)
    B, N, _ = ps.shape
    n_inner = N - 2
    npad = max(8, ((n_inner + 7) // 8) * 8)

    # [x0, x1, x2, x3, y0, y1, y2, y3] per curve, flattened 1-D for compact SMEM.
    ctrl = jnp.stack(
        [ps[:, 0, 0], ct[:, 0], ct[:, 2], ps[:, -1, 0],
         ps[:, 0, 1], ct[:, 1], ct[:, 3], ps[:, -1, 1]], axis=1
    ).reshape(B * 8)

    inner = ps[:, 1:-1, :]                                     # (B, N-2, 2)
    if npad > n_inner:
        pts = jnp.pad(inner, ((0, 0), (0, npad - n_inner), (0, 0)))
    else:
        pts = inner

    out = pl.pallas_call(
        _make_bezier_kernel(n_inner, npad),
        out_shape=jax.ShapeDtypeStruct((B, OUT_SUB, OUT_LANE), jnp.float32),
        grid=(B,),
        in_specs=[
            pl.BlockSpec(memory_space=pltpu.MemorySpace.SMEM),     # ctrl (B*8,)
            pl.BlockSpec((1, npad, 2), lambda b: (b, 0, 0)),       # pts (B,NPAD,2)
        ],
        out_specs=pl.BlockSpec((1, OUT_SUB, OUT_LANE), lambda b: (b, 0, 0)),
        compiler_params=pltpu.CompilerParams(
            dimension_semantics=("parallel",)),
    )(ctrl, pts)
    return out[:, 0, 0]


def bezier_forward(ps, ctps):
    """Single-curve forward matching the original PyTorch module semantics."""
    return bezier_forward_batched(jnp.asarray(ps)[None], jnp.asarray(ctps)[None])[0]


def bezier_forward_ref(ps, ctps):
    """Pure-JAX reference mirroring the PyTorch forward (float32)."""
    ps = jnp.asarray(ps, jnp.float32)
    ctps = jnp.asarray(ctps, jnp.float32)
    x0, y0 = ps[0, 0], ps[0, 1]
    x3, y3 = ps[-1, 0], ps[-1, 1]
    x1, y1, x2, y2 = ctps[0], ctps[1], ctps[2], ctps[3]
    t = jnp.linspace(0.0, 1.0, T_SAMPLES).astype(jnp.float32)
    s = 1.0 - t
    bx = s * (s * (s * x0 + t * x1) + t * (s * x1 + t * x2)) \
       + t * (s * (s * x1 + t * x2) + t * (s * x2 + t * x3))
    by = s * (s * (s * y0 + t * y1) + t * (s * y1 + t * y2)) \
       + t * (s * (s * y1 + t * y2) + t * (s * y2 + t * y3))
    bez = jnp.stack((bx, by), axis=1)                     # (81, 2)
    inner = ps[1:-1]                                      # (N-2, 2)
    diffs = bez[None, :, :] - inner[:, None, :]           # (N-2, 81, 2)
    dists = jnp.sqrt(jnp.sum(diffs ** 2, axis=2))         # (N-2, 81)
    return jnp.sum(jnp.min(dists, axis=1))


if __name__ == "__main__":
    key = jax.random.PRNGKey(0)
    k1, k2 = jax.random.split(key)
    B, N = 4, 10                     # 4 curves, 10 points each -> 8 inner points
    ps = jax.random.uniform(k1, (B, N, 2), jnp.float32) * 10.0
    ctps = jax.random.uniform(k2, (B, 4), jnp.float32) * 10.0   # [x1, y1, x2, y2]

    out = jax.block_until_ready(bezier_forward_batched(ps, ctps))
    ref = jax.block_until_ready(
        jnp.stack([bezier_forward_ref(ps[b], ctps[b]) for b in range(B)]))
    np.testing.assert_allclose(np.asarray(out), np.asarray(ref), rtol=1e-4, atol=1e-3)

    # Single-curve path (original module semantics).
    single = jax.block_until_ready(bezier_forward(ps[0], ctps[0]))
    np.testing.assert_allclose(np.asarray(single), np.asarray(ref[0]),
                               rtol=1e-4, atol=1e-3)

    print("KERNEL_OK")
</pallas_src>

<mosaic_0001>
module attributes {stable_mosaic.version = 11 : i64} {
  func.func @kernel(%arg0: i32, %arg1: memref<32xf32, #tpu.memory_space<smem>>, %arg2: memref<1x8x2xf32, #tpu.memory_space<vmem>>, %arg3: memref<1x8x128xf32, #tpu.memory_space<vmem>>) attributes {dimension_semantics = [#tpu.dimension_semantics<parallel>], iteration_bounds = array<i64: 4>, scalar_prefetch = 0 : i64, scratch_operands = 0 : i64, tpu.core_type = #tpu.core_type<tc>, window_params = [{transform_indices = @transform_0, window_bounds = array<i64: 32>}, {transform_indices = @transform_1, window_bounds = array<i64: 1, 8, 2>}, {transform_indices = @transform_2, window_bounds = array<i64: 1, 8, 128>}]} {
    %c8_i32 = arith.constant 8 : i32
    %0 = arith.muli %c8_i32, %arg0 : i32
    %c0_i32 = arith.constant 0 : i32
    %1 = arith.addi %0, %c0_i32 : i32
    %2 = arith.index_cast %1 : i32 to index
    %3 = memref.load %arg1[%2] : memref<32xf32, #tpu.memory_space<smem>>
    %c1_i32 = arith.constant 1 : i32
    %4 = arith.addi %0, %c1_i32 : i32
    %5 = arith.index_cast %4 : i32 to index
    %6 = memref.load %arg1[%5] : memref<32xf32, #tpu.memory_space<smem>>
    %c2_i32 = arith.constant 2 : i32
    %7 = arith.addi %0, %c2_i32 : i32
    %8 = arith.index_cast %7 : i32 to index
    %9 = memref.load %arg1[%8] : memref<32xf32, #tpu.memory_space<smem>>
    %c3_i32 = arith.constant 3 : i32
    %10 = arith.addi %0, %c3_i32 : i32
    %11 = arith.index_cast %10 : i32 to index
    %12 = memref.load %arg1[%11] : memref<32xf32, #tpu.memory_space<smem>>
    %c4_i32 = arith.constant 4 : i32
    %13 = arith.addi %0, %c4_i32 : i32
    %14 = arith.index_cast %13 : i32 to index
    %15 = memref.load %arg1[%14] : memref<32xf32, #tpu.memory_space<smem>>
    %c5_i32 = arith.constant 5 : i32
    %16 = arith.addi %0, %c5_i32 : i32
    %17 = arith.index_cast %16 : i32 to index
    %18 = memref.load %arg1[%17] : memref<32xf32, #tpu.memory_space<smem>>
    %c6_i32 = arith.constant 6 : i32
    %19 = arith.addi %0, %c6_i32 : i32
    %20 = arith.index_cast %19 : i32 to index
    %21 = memref.load %arg1[%20] : memref<32xf32, #tpu.memory_space<smem>>
    %c7_i32 = arith.constant 7 : i32
    %22 = arith.addi %0, %c7_i32 : i32
    %23 = arith.index_cast %22 : i32 to index
    %24 = memref.load %arg1[%23] : memref<32xf32, #tpu.memory_space<smem>>
    %25 = tpu.iota {dimensions = array<i32: 1>} : vector<1x128xi32>
    %c80_i32 = arith.constant 80 : i32
    %26 = vector.broadcast %c80_i32 : i32 to vector<1x128xi32>
    %27 = arith.minsi %25, %26 : vector<1x128xi32>
    %28 = arith.sitofp %27 : vector<1x128xi32> to vector<1x128xf32>
    %cst = arith.constant 1.250000e-02 : f32
    %29 = vector.broadcast %cst : f32 to vector<1x128xf32>
    %30 = arith.mulf %28, %29 : vector<1x128xf32>
    %cst_0 = arith.constant 1.000000e+00 : f32
    %31 = vector.broadcast %cst_0 : f32 to vector<1x128xf32>
    %32 = arith.subf %31, %30 : vector<1x128xf32>
    %33 = vector.broadcast %3 : f32 to vector<1x128xf32>
    %34 = arith.mulf %32, %33 : vector<1x128xf32>
    %35 = vector.broadcast %6 : f32 to vector<1x128xf32>
    %36 = arith.mulf %30, %35 : vector<1x128xf32>
    %37 = arith.addf %34, %36 : vector<1x128xf32>
    %38 = arith.mulf %32, %37 : vector<1x128xf32>
    %39 = vector.broadcast %6 : f32 to vector<1x128xf32>
    %40 = arith.mulf %32, %39 : vector<1x128xf32>
    %41 = vector.broadcast %9 : f32 to vector<1x128xf32>
    %42 = arith.mulf %30, %41 : vector<1x128xf32>
    %43 = arith.addf %40, %42 : vector<1x128xf32>
    %44 = arith.mulf %30, %43 : vector<1x128xf32>
    %45 = arith.addf %38, %44 : vector<1x128xf32>
    %46 = arith.mulf %32, %45 : vector<1x128xf32>
    %47 = vector.broadcast %6 : f32 to vector<1x128xf32>
    %48 = arith.mulf %32, %47 : vector<1x128xf32>
    %49 = vector.broadcast %9 : f32 to vector<1x128xf32>
    %50 = arith.mulf %30, %49 : vector<1x128xf32>
    %51 = arith.addf %48, %50 : vector<1x128xf32>
    %52 = arith.mulf %32, %51 : vector<1x128xf32>
    %53 = vector.broadcast %9 : f32 to vector<1x128xf32>
    %54 = arith.mulf %32, %53 : vector<1x128xf32>
    %55 = vector.broadcast %12 : f32 to vector<1x128xf32>
    %56 = arith.mulf %30, %55 : vector<1x128xf32>
    %57 = arith.addf %54, %56 : vector<1x128xf32>
    %58 = arith.mulf %30, %57 : vector<1x128xf32>
    %59 = arith.addf %52, %58 : vector<1x128xf32>
    %60 = arith.mulf %30, %59 : vector<1x128xf32>
    %61 = arith.addf %46, %60 : vector<1x128xf32>
    %62 = vector.broadcast %15 : f32 to vector<1x128xf32>
    %63 = arith.mulf %32, %62 : vector<1x128xf32>
    %64 = vector.broadcast %18 : f32 to vector<1x128xf32>
    %65 = arith.mulf %30, %64 : vector<1x128xf32>
    %66 = arith.addf %63, %65 : vector<1x128xf32>
    %67 = arith.mulf %32, %66 : vector<1x128xf32>
    %68 = vector.broadcast %18 : f32 to vector<1x128xf32>
    %69 = arith.mulf %32, %68 : vector<1x128xf32>
    %70 = vector.broadcast %21 : f32 to vector<1x128xf32>
    %71 = arith.mulf %30, %70 : vector<1x128xf32>
    %72 = arith.addf %69, %71 : vector<1x128xf32>
    %73 = arith.mulf %30, %72 : vector<1x128xf32>
    %74 = arith.addf %67, %73 : vector<1x128xf32>
    %75 = arith.mulf %32, %74 : vector<1x128xf32>
    %76 = vector.broadcast %18 : f32 to vector<1x128xf32>
    %77 = arith.mulf %32, %76 : vector<1x128xf32>
    %78 = vector.broadcast %21 : f32 to vector<1x128xf32>
    %79 = arith.mulf %30, %78 : vector<1x128xf32>
    %80 = arith.addf %77, %79 : vector<1x128xf32>
    %81 = arith.mulf %32, %80 : vector<1x128xf32>
    %82 = vector.broadcast %21 : f32 to vector<1x128xf32>
    %83 = arith.mulf %32, %82 : vector<1x128xf32>
    %84 = vector.broadcast %24 : f32 to vector<1x128xf32>
    %85 = arith.mulf %30, %84 : vector<1x128xf32>
    %86 = arith.addf %83, %85 : vector<1x128xf32>
    %87 = arith.mulf %30, %86 : vector<1x128xf32>
    %88 = arith.addf %81, %87 : vector<1x128xf32>
    %89 = arith.mulf %30, %88 : vector<1x128xf32>
    %90 = arith.addf %75, %89 : vector<1x128xf32>
    %c0 = arith.constant 0 : index
    %c0_1 = arith.constant 0 : index
    %c0_2 = arith.constant 0 : index
    %91 = vector.load %arg2[%c0, %c0_1, %c0_2] : memref<1x8x2xf32, #tpu.memory_space<vmem>>, vector<1x8x2xf32>
    %92 = vector.shape_cast %91 : vector<1x8x2xf32> to vector<8x2xf32>
    %93 = vector.extract_strided_slice %92 {offsets = [0, 0], sizes = [8, 1], strides = [1, 1]} : vector<8x2xf32> to vector<8x1xf32>
    %94 = vector.extract_strided_slice %92 {offsets = [0, 1], sizes = [8, 1], strides = [1, 1]} : vector<8x2xf32> to vector<8x1xf32>
    %95 = vector.broadcast %61 : vector<1x128xf32> to vector<8x128xf32>
    %96 = vector.broadcast %93 : vector<8x1xf32> to vector<8x128xf32>
    %97 = arith.subf %95, %96 : vector<8x128xf32>
    %98 = vector.broadcast %90 : vector<1x128xf32> to vector<8x128xf32>
    %99 = vector.broadcast %94 : vector<8x1xf32> to vector<8x128xf32>
    %100 = arith.subf %98, %99 : vector<8x128xf32>
    %101 = arith.mulf %97, %97 : vector<8x128xf32>
    %102 = arith.mulf %100, %100 : vector<8x128xf32>
    %103 = arith.addf %101, %102 : vector<8x128xf32>
    %cst_3 = arith.constant dense<0x7F800000> : vector<8xf32>
    %104 = vector.multi_reduction <minimumf>, %103, %cst_3 [1] : vector<8x128xf32> to vector<8xf32>
    %105 = vector.shape_cast %104 : vector<8xf32> to vector<8x1xf32>
    %106 = math.sqrt %105 : vector<8x1xf32>
    %107 = vector.shape_cast %106 : vector<8x1xf32> to vector<1x8x1xf32>
    %cst_4 = arith.constant dense<0.000000e+00> : vector<1xf32>
    %108 = vector.multi_reduction <add>, %107, %cst_4 [1, 2] : vector<1x8x1xf32> to vector<1xf32>
    %109 = vector.shape_cast %108 : vector<1xf32> to vector<1x1x1xf32>
    %110 = vector.extract %109[0, 0, 0] : f32 from vector<1x1x1xf32>
    %111 = vector.broadcast %110 : f32 to vector<1x8x128xf32>
    %c0_5 = arith.constant 0 : index
    %c0_6 = arith.constant 0 : index
    %c0_7 = arith.constant 0 : index
    %112 = vector.load %arg3[%c0_5, %c0_6, %c0_7] : memref<1x8x128xf32, #tpu.memory_space<vmem>>, vector<1x8x128xf32>
    tpu.vector_store %arg3[%c0_5, %c0_6, %c0_7], %111 {strides = array<i32>} : memref<1x8x128xf32, #tpu.memory_space<vmem>>, vector<1x8x128xf32>,
    return
  }
  func.func @transform_0(%arg0: i32) -> i32 {
    %c0_i32 = arith.constant 0 : i32
    %c0_i32_0 = arith.constant 0 : i32
    return %c0_i32 : i32
  }
  func.func @transform_1(%arg0: i32) -> (i32, i32, i32) {
    %c0_i32 = arith.constant 0 : i32
    %c0_i32_0 = arith.constant 0 : i32
    %c0_i32_1 = arith.constant 0 : i32
    return %arg0, %c0_i32, %c0_i32_0 : i32, i32, i32
  }
  func.func @transform_2(%arg0: i32) -> (i32, i32, i32) {
    %c0_i32 = arith.constant 0 : i32
    %c0_i32_0 = arith.constant 0 : i32
    %c0_i32_1 = arith.constant 0 : i32
    return %arg0, %c0_i32, %c0_i32_0 : i32, i32, i32
  }
}

</mosaic_0001>

<bundles_post_ra>
// kernel: tpu_custom_call.1
= control target key start
LH: loop header
LB: loop body
LE: loop exit
PB: predicated region body
PF: predicated region fallthrough
CT: control target
= control target key end

     0   :  { %7 = vsyncpa [#allocation4], 0  ;;  %s621_s0 = inlined_call_operand.vmem [shape: f32[32], index: 0, kind: input, shape index: {}]   ;;  %s622_s1 = inlined_call_operand.vmem [shape: f32[4,8,2], index: 1, kind: input, shape index: {}]   ;;  %s623_s2 = inlined_call_operand.hbm [shape: f32[4,8,128], index: 2, kind: output, shape index: {}]  }
   0x1   :  { %8 = vsyncpa [#allocation3], 0 }
   0x2   :  { %10 = vsyncpa [#allocation3 + $0x1], 0  ;;  %s521_s9 = smov 0   ;;  %s523_s10 = smov 0  }
   0x3   :  { %s525_s11 = smov 0   ;;  %s527_s12 = smov 0  }
   0x4 LB: > { %s542_s13 = sadd.s32 4294967295, %s501_s12   ;;  %s349_s14 = sadd.s32 4294967294, %s501_s12   ;;  %s501_s12 = sphi %s527_s12, %s629_s12   ;;  %s497_s11 = sphi %s525_s11, %s628_s11   ;;  %s493_s10 = sphi %s523_s10, %s627_s10   ;;  %s489_s9 = sphi %s521_s9, %s626_s9  }
   0x5   : > { %s546_s15 = sadd.s32 1, %s501_s12   ;;  %s70_s16 = sadd.s32 1, %s497_s11 }
   0x6   : > { %s67_s17 = ssub.s32 %s501_s12, %s546_s15  ;;  %p80_p0 = scmp.ne.s32.totalorder %s497_s11, %s493_s10 }
   0x7   : > { %p68_p1 = scmp.eq.s32.totalorder %s67_s17, 0  ;;  %p81_p2 = scmp.eq.s32.totalorder %s542_s13, 3 }
   0x8   : > { %p86_p3 = scmp.ne.s32.totalorder %s493_s10, %s489_s9  ;;  %p87_p4 = scmp.eq.s32.totalorder %s349_s14, 3 }
   0x9   : > { %s557_s18 = scalar_select %p68_p1, %s497_s11, %s70_s16  }
   0xa   : > { %p559_p5 = por %p81_p2, %p80_p0  ;;  %p563_p6 = por %p87_p4, %p86_p3 }
   0xb   : > { %p350_p7 = scmp.ge.s32.totalorder %s501_s12, 1  ;;  %p94_p8 = scmp.lt.s32.totalorder %s501_s12, 5 }
   0xc   : > { %p378_p9 = scmp.eq.s32.totalorder %s542_s13, 0  ;;  %s106_s23 = sshll.u32 %s621_s0, 4  ;;  %s107_s23 = int_to_ptr.vmem [resolvable:$true] %s106_s23 }
   0xd   : > { %p95_p10 = pnand %p350_p7, %p94_p8  ;;  %s503_s24 = smov [#allocation2]  }
   0xf   : > { %p370_p11 = pneg %p95_p10  ;;  %126 = sbr.rel (%p95_p10) target bundleno = 480 (0x1e0), region = 28 }
  0x11   : > { %p371_p12 = pnand %p378_p9, %p370_p11 }
  0x13   : > { %373 = dma.vmem_to_smem (!%p371_p12), %s107_s23, 16, %s503_s24, [#allocation4]  }
  0x14   : > { %480 = dma.done.wait (%p378_p9), [#allocation4], 16  }
  0x15   : > { %482 = vsyncadd (%p378_p9), [#allocation4], 4294967280 }
  0x16   : > { %133 = sfence }
  0x17   : > { %p149_p13 = scmp.lt.s32.totalorder %s542_s13, 3  ;;  %v504_v0 = vmov 0   ;;  %v505_v2 = vmov 1   ;;  %v169_v3 = vlaneseq  ;;  %s579_s30 = sshll.u32 %s542_s13, 3  ;;  %vm249_vm2 = vcmask 7168  }
  0x18   : > { %416 = vset.pattern.permute.xlu0 %v504_v0  ;;  %s155_s3 = sadd.s32 1, %s579_s30  ;;  %s157_s4 = sadd.s32 2, %s579_s30 }
  0x19   : > { %s150_s25 = scalar_select %p149_p13, %s542_s13, 3  ;;  %v170_v4 = vand.u32 127, %v169_v3 }
  0x1a   : > { %s154_s5 = sld [smem:[#allocation2 + %s579_s30]]  ;;  %s159_s6 = sadd.s32 3, %s579_s30 }
  0x1b   : > { %s356_s26 = sshll.u32 %s150_s25, 3  ;;  %vm171_vm0 = vcmp.lt.s32.totalorder %v170_v4, 80  ;;  %s156_s7 = sld [smem:[#allocation2 + %s155_s3]] }
  0x1c   : > { %s152_s29 = scalar_lea.vmem %s622_s1, %s356_s26  ;;  %v172_v5 = vsel %vm171_vm0, %v170_v4, 80  ;;  %s161_s8 = sadd.s32 4, %s579_s30 }
  0x1d   : > { %v220_v1 = vld [vmem:[%s152_s29] sm:$0xff]  ;;  %s158_s14 = sld [smem:[#allocation2 + %s157_s4]]  ;;  %s163_s16 = sadd.s32 5, %s579_s30  ;;  %v173_v6 = vcvt.s32.f32 %v172_v5 }
  0x1e   : > { %223 = vperm.xlu0 %416, %v220_v1   ;;  %s160_s13 = sld [smem:[#allocation2 + %s159_s6]]  ;;  %s165_s17 = sadd.s32 6, %s579_s30 }
  0x1f   : > { %s162_s21 = sld [smem:[#allocation2 + %s161_s8]]  ;;  %s167_s22 = sadd.s32 7, %s579_s30  ;;  %v174_v7 = vmul.f32 0.0125, %v173_v6 }
  0x20   : > { %s164_s23 = sld [smem:[#allocation2 + %s163_s16]]  ;;  %v176_v11 = vstv %s154_s5  ;;  %s146_s26 = sand.u32 1, %s493_s10  }
  0x21   : > { %s166_s24 = sld [smem:[#allocation2 + %s165_s17]]  ;;  %v175_v8 = vsub.f32 1.0, %v174_v7  ;;  %v178_v9 = vstv %s156_s7  ;;  %s355_s27 = sshll.u32 %s146_s26, 3 }
  0x22   : > { %s168_s25 = sld [smem:[#allocation2 + %s167_s22]]  ;;  %v179_v15 = vmul.f32 %v178_v9, %v174_v7  ;;  %s273_s3 = scalar_lea.hbm %s623_s2, %s579_s30 }
  0x23   : > { %v183_v10 = vstv %s158_s14  ;;  %v177_v19 = vmul.f32 %v176_v11, %v175_v8  ;;  %v182_v20 = vmul.f32 %v178_v9, %v175_v8  ;;  %s148_s4 = scalar_lea.vmem [#allocation5], %s355_s27  ;;  %s277_s6 = sshll.u32 %s273_s3, 4  ;;  %s278_s6 = int_to_ptr.hbm [resolvable:$true] %s277_s6 }
  0x24   : > { %v191_v12 = vstv %s160_s13  ;;  %v184_v16 = vmul.f32 %v183_v10, %v174_v7  ;;  %v190_v21 = vmul.f32 %v183_v10, %v175_v8  ;;  %s275_s5 = sshll.u32 %s148_s4, 4  ;;  %s263_s8 = scalar_lea.sflag [#allocation3], %s146_s26  ;;  %s276_s5 = int_to_ptr.vmem [resolvable:$true] %s275_s5 }
  0x25   : > { %v198_v13 = vstv %s162_s21  ;;  %v192_v22 = vmul.f32 %v191_v12, %v174_v7  ;;  %v180_v29 = vadd.f32 %v179_v15, %v177_v19  ;;  %s449_s14 = sshra.s32 %s278_s6, 4  ;;  %s455_s30 = scalar_lea.hbm %s623_s2, 32  ;;  %s450_s14 = int_to_ptr.hbm [resolvable:$true] %s449_s14 }
  0x26   : > { %417 = vset.pattern.permute.xlu0 %v505_v2  ;;  %v200_v14 = vstv %s164_s23  ;;  %v199_v23 = vmul.f32 %v198_v13, %v175_v8  ;;  %v185_v30 = vadd.f32 %v184_v16, %v182_v20  ;;  %s451_s16 = scalar_lea.hbm %s450_s14, 8  ;;  %p456_p3 = scmp.lt.s32.totalorder %s450_s14, %s623_s2 }
  0x27   : > { %228 = vperm.xlu0 %417, %v220_v1   ;;  %v205_v17 = vstv %s166_s24  ;;  %v201_v24 = vmul.f32 %v200_v14, %v174_v7  ;;  %v204_v25 = vmul.f32 %v200_v14, %v175_v8  ;;  %v193_v31 = vadd.f32 %v192_v22, %v190_v21  ;;  %p452_p0 = scmp.ne.s32.totalorder %s450_s14, %s451_s16  ;;  %p457_p4 = scmp.lt.s32.totalorder %s455_s30, %s451_s16 }
  0x28   : > { %v213_v18 = vstv %s168_s25  ;;  %v206_v26 = vmul.f32 %v205_v17, %v174_v7  ;;  %v212_v27 = vmul.f32 %v205_v17, %v175_v8  ;;  %v181_v35 = vmul.f32 %v180_v29, %v175_v8 }
  0x29   : > { %v214_v28 = vmul.f32 %v213_v18, %v174_v7  ;;  %v202_v32 = vadd.f32 %v201_v24, %v199_v23  ;;  %v186_v36 = vmul.f32 %v185_v30, %v174_v7  ;;  %v189_v37 = vmul.f32 %v185_v30, %v175_v8  ;;  %p453_p1 = pnand %p452_p0, %p559_p5  ;;  %p458_p7 = por %p457_p4, %p456_p3 }
  0x2a   : > { %v207_v33 = vadd.f32 %v206_v26, %v204_v25  ;;  %v194_v38 = vmul.f32 %v193_v31, %v174_v7 }
  0x2b   : > { %v215_v34 = vadd.f32 %v214_v28, %v212_v27  ;;  %v203_v39 = vmul.f32 %v202_v32, %v175_v8  ;;  %v187_v43 = vadd.f32 %v186_v36, %v181_v35  ;;  %p454_p2 = pneg %p453_p1 }
  0x2c   : > { %v208_v40 = vmul.f32 %v207_v33, %v174_v7  ;;  %v211_v41 = vmul.f32 %v207_v33, %v175_v8  ;;  %v195_v44 = vadd.f32 %v194_v38, %v189_v37 }
  0x2d   : > { %v216_v42 = vmul.f32 %v215_v34, %v174_v7  ;;  %v188_v47 = vmul.f32 %v187_v43, %v175_v8  ;;  %p459_p8 = pnand %p458_p7, %p454_p2 }
  0x2e   : > { %v209_v45 = vadd.f32 %v208_v40, %v203_v39  ;;  %v196_v48 = vmul.f32 %v195_v44, %v174_v7 }
  0x2f   : > { %v217_v46 = vadd.f32 %v216_v42, %v211_v41 }
  0x30   : > { %v210_v50 = vmul.f32 %v209_v45, %v175_v8  ;;  %v197_v52 = vadd.f32 %v196_v48, %v188_v47 }
  0x31   : > { %v218_v51 = vmul.f32 %v217_v46, %v174_v7 }
  0x33   : > { %v219_v53 = vadd.f32 %v218_v51, %v210_v50 }
  0x90   : > { %v224_v49 = vpop.permute.xlu0 %223 }
  0x91   : > { %v226_v54 = vsub.f32 %v197_v52, %v224_v49 }
  0x93   : > { %v232_v57 = vmul.f32 %v226_v54, %v226_v54 }
  0x99   : > { %v229_v55 = vpop.permute.xlu0 %228 }
  0x9a   : > { %v231_v56 = vsub.f32 %v219_v53, %v229_v55 }
  0x9c   : > { %v233_v58 = vmul.f32 %v231_v56, %v231_v56 }
  0x9e   : > { %v234_v59 = vadd.f32 %v233_v58, %v232_v57 }
  0xa0   : > { %235 = vmin.xlane.f32.xlu1 %v234_v59 }
 0x113   : > { %v236_v60 = vpop.xlane.xlu1 %235 }
 0x114   : > { %418 = vrsqrt.f32 %v236_v60  ;;  %vm244_vm1 = vcmp.eq.f32.partialorder %v236_v60, inf  ;;  %v247_v4 = vand.u32 2147483648, %v236_v60  ;;  %vm246_vm3 = vcmp.eq.f32.partialorder %v236_v60, 0.0 }
 0x11a   : > { %v419_v61 = vpop.eup %418 }
 0x11b   : > { %v238_v62 = vmul.f32 %v419_v61, %v236_v60 }
 0x11d   : > { %v239_v63 = vmul.f32 %v419_v61, %v238_v62 }
 0x11f   : > { %v240_v0 = vmul.f32 0.5, %v239_v63 }
 0x121   : > { %v241_v1 = vsub.f32 1.5, %v240_v0 }
 0x123   : > { %v242_v2 = vmul.f32 %v419_v61, %v241_v1 }
 0x125   : > { %v243_v3 = vmul.f32 %v242_v2, %v236_v60 }
 0x127   : > { %v245_v5 = vsel %vm244_vm1, %v236_v60, %v243_v3 }
 0x128   : > { %v248_v6 = vsel %vm246_vm3, %v247_v4, %v245_v5 }
 0x129   : > { %v250_v7 = vsel %vm249_vm2, %v248_v6, 0.0 }
 0x12a   : > { %251 = vadd.xlane.f32.xlu1 %v250_v7 }
 0x19d   : > { %v252_v8 = vpop.xlane.xlu1 %251 }
 0x19e   : > { %v253_v9 = vrot.slane %v252_v8, 4 }
 0x1a0   : > { %v254_v10 = vadd.f32 %v253_v9, %v252_v8 }
 0x1a2   : > { %v255_v11 = vrot.slane %v254_v10, 2 }
 0x1a4   : > { %v256_v12 = vadd.f32 %v255_v11, %v254_v10 }
 0x1a6   : > { %v257_v13 = vrot.slane %v256_v12, 1 }
 0x1a8   : > { %v258_v14 = vadd.f32 %v257_v13, %v256_v12 }
 0x1aa   : > { %362 = vpush %v258_v14 }
 0x1db   : > { %s363_s7 = spop %362 }
 0x1dc   : > { %v260_v15 = vstv %s363_s7 }
 0x1dd   : > { %261 = vst [vmem:[%s148_s4] sm:$0xff] %v260_v15 }
 0x1de   : > { %462 = shalt.err (!%p459_p8)
}
 0x1df   : > { %368 = dma.vmem_to_hbm [thread:$0]  (%p559_p5), %s276_s5, 128, %s278_s6, %s263_s8  }
 0x1e0 PF: > { %p380_p9 = scmp.ge.s32.totalorder %s501_s12, 2  ;;  %s289_s23 = sand.u32 1, %s489_s9  }
 0x1e1   : > { %s290_s24 = scalar_lea.sflag [#allocation3], %s289_s23 }
 0x1e2   : > { %p375_p10 = pnand %p380_p9, %p563_p6 }
 0x1e4   : > { %p376_p11 = pneg %p375_p10 }
 0x1e6   : > { %484 = dma.done.wait (%p376_p11), %s290_s24, 128  }
 0x1e7   : > { %486 = vsyncadd (%p376_p11), %s290_s24, 4294967168  ;;  %p13_p12 = scmp.ge.s32.totalorder %s546_s15, 6   ;;  %s626_s9 = smov %s493_s10 }
 0x1e8   : > { %s627_s10 = smov %s497_s11  ;;  %s628_s11 = smov %s557_s18 }
 0x1e9   : > { %s629_s12 = smov %s546_s15  ;;  %15 = sbr.rel (!%p13_p12) target bundleno = 4 (0x4), region = 68 }
 0x1ee   :  { %296 = vsyncpa [#allocation3], 1 }
 0x1ef   :  { %298 = vsyncpa [#allocation3 + $0x1], 1 }
 0x1f0   :  { %299 = vsyncpa [#allocation4], 1 }
 0x1f1   :  { %301 = vsyncpa [#allocation4 + $0x1], 1 }

</bundles_post_ra>
